<compile_context>
chip_gen: v6e
topology: v6e:2x2x1
jax: 0.10.0
libtpu: 0.0.40
codegen_flags: <defaults>
</compile_context>

<pallas_src>
import functools

import jax
import jax.numpy as jnp
from jax.experimental import pallas as pl
from jax.experimental.pallas import tpu as pltpu


def _se_kernel(x_ref, w1_ref, b1_ref, w2_ref, b2_ref, o_ref, *, inv_hw):
    # x_ref/o_ref: (TB, C, HW)   w1_ref: (C, MID)  b1_ref: (1, MID)
    # w2_ref: (MID, C)           b2_ref: (1, C)
    x = x_ref[...]  # (TB, C, HW), native dtype

    # Global average pool over the lane (spatial) axis.  Accumulate in f32
    # without materializing an f32 copy of x; 1/HW is a compile-time constant.
    pooled = jnp.sum(x, axis=-1, dtype=jnp.float32) * inv_hw          # (TB, C)

    # Linear1 + ReLU6.
    h = jnp.dot(pooled, w1_ref[...], preferred_element_type=jnp.float32)
    h = jnp.clip(h + b1_ref[...], 0.0, 6.0)                           # (TB, MID)

    # Linear2 + ReLU6.
    s = jnp.dot(h, w2_ref[...], preferred_element_type=jnp.float32)
    s = jnp.clip(s + b2_ref[...], 0.0, 6.0)                           # (TB, C)

    # Channel-wise gate, broadcast along the spatial lanes, in x's dtype.
    o_ref[...] = x * s[:, :, None].astype(x.dtype)


def squeeze_and_excite(x_nchw, w1, b1, w2, b2, *, block_bytes=1 << 20):
    """x_nchw: (B, C, H, W); w1: (C, MID); b1: (1, MID); w2: (MID, C); b2: (1, C)."""
    b, c, h, w = x_nchw.shape
    hw = h * w
    mid = w1.shape[1]

    x_flat = x_nchw.reshape(b, c, hw)
    itemsize = x_nchw.dtype.itemsize

    # Largest divisor of B whose (TB, C, HW) slab fits the per-buffer budget.
    slab = max(c * hw * itemsize, 1)
    tb_cap = max(1, min(b, block_bytes // slab))
    tb = 1
    for d in range(1, b + 1):
        if b % d == 0 and d <= tb_cap:
            tb = d

    cost = pl.CostEstimate(
        flops=3 * b * c * hw + 4 * b * c * mid,
        transcendentals=0,
        bytes_accessed=2 * b * c * hw * itemsize
        + (w1.size + w2.size + b1.size + b2.size) * w1.dtype.itemsize,
    )

    kernel = functools.partial(_se_kernel, inv_hw=1.0 / float(hw))

    out_flat = pl.pallas_call(
        kernel,
        out_shape=jax.ShapeDtypeStruct((b, c, hw), x_nchw.dtype),
        grid=(b // tb,),
        in_specs=[
            pl.BlockSpec((tb, c, hw), lambda i: (i, 0, 0)),   # batch-tile slab
            pl.BlockSpec((c, mid), lambda i: (0, 0)),         # resident weights
            pl.BlockSpec((1, mid), lambda i: (0, 0)),
            pl.BlockSpec((mid, c), lambda i: (0, 0)),
            pl.BlockSpec((1, c), lambda i: (0, 0)),
        ],
        out_specs=pl.BlockSpec((tb, c, hw), lambda i: (i, 0, 0)),
        compiler_params=pltpu.CompilerParams(
            dimension_semantics=("parallel",),
        ),
        cost_estimate=cost,
    )(x_flat, w1, b1, w2, b2)

    return out_flat.reshape(b, c, h, w)


def _reference(x, w1, b1, w2, b2):
    pooled = jnp.mean(x, axis=(2, 3))
    h = jnp.clip(pooled @ w1 + b1, 0.0, 6.0)
    s = jnp.clip(h @ w2 + b2, 0.0, 6.0)
    return x * s[:, :, None, None]


def _make_params(key, c, divide=4):
    mid = c // divide
    k1, k2, k3, k4 = jax.random.split(key, 4)
    # PyTorch-Linear-style init: U(-1/sqrt(fan_in), 1/sqrt(fan_in)).
    bound1 = 1.0 / jnp.sqrt(jnp.float32(c))
    w1 = jax.random.uniform(k1, (c, mid), jnp.float32, -bound1, bound1)
    b1 = jax.random.uniform(k2, (1, mid), jnp.float32, -bound1, bound1)
    bound2 = 1.0 / jnp.sqrt(jnp.float32(mid))
    w2 = jax.random.uniform(k3, (mid, c), jnp.float32, -bound2, bound2)
    b2 = jax.random.uniform(k4, (1, c), jnp.float32, -bound2, bound2)
    return w1, b1, w2, b2


if __name__ == "__main__":
    key = jax.random.PRNGKey(0)
    kx1, kp1, kx2, kp2 = jax.random.split(key, 4)

    # Case 1: lane-aligned spatial extent (16x16 = 256).
    B, C, H, W = 2, 32, 16, 16
    x = jax.random.normal(kx1, (B, C, H, W), dtype=jnp.float32)
    w1, b1, w2, b2 = _make_params(kp1, C)
    out = jax.block_until_ready(squeeze_and_excite(x, w1, b1, w2, b2))
    ref = _reference(x, w1, b1, w2, b2)
    assert out.shape == (B, C, H, W)
    assert jnp.allclose(out, ref, atol=1e-4, rtol=1e-5)

    # Case 2: VarGFaceNet-like stage4 shape (7x7 = 49), non-lane-aligned,
    # exercising the no-padding full-extent block path.
    B2, C2, H2, W2 = 2, 40, 7, 7
    x2 = jax.random.normal(kx2, (B2, C2, H2, W2), dtype=jnp.float32)
    w1b, b1b, w2b, b2b = _make_params(kp2, C2)
    out2 = jax.block_until_ready(squeeze_and_excite(x2, w1b, b1b, w2b, b2b))
    ref2 = _reference(x2, w1b, b1b, w2b, b2b)
    assert out2.shape == (B2, C2, H2, W2)
    assert jnp.allclose(out2, ref2, atol=1e-4, rtol=1e-5)

    print("KERNEL_OK")
</pallas_src>

<mosaic_0001>
module attributes {stable_mosaic.version = 11 : i64} {
  func.func @_se_kernel(%arg0: i32, %arg1: memref<2x32x256xf32, #tpu.memory_space<vmem>>, %arg2: memref<32x8xf32, #tpu.memory_space<vmem>>, %arg3: memref<1x8xf32, #tpu.memory_space<vmem>>, %arg4: memref<8x32xf32, #tpu.memory_space<vmem>>, %arg5: memref<1x32xf32, #tpu.memory_space<vmem>>, %arg6: memref<2x32x256xf32, #tpu.memory_space<vmem>>) attributes {dimension_semantics = [#tpu.dimension_semantics<parallel>], iteration_bounds = array<i64: 1>, scalar_prefetch = 0 : i64, scratch_operands = 0 : i64, tpu.core_type = #tpu.core_type<tc>, window_params = [{transform_indices = @transform_0, window_bounds = array<i64: 2, 32, 256>}, {pipeline_mode = #tpu.pipeline_mode<synchronous>, transform_indices = @transform_1, window_bounds = array<i64: 32, 8>}, {pipeline_mode = #tpu.pipeline_mode<synchronous>, transform_indices = @transform_2, window_bounds = array<i64: 1, 8>}, {pipeline_mode = #tpu.pipeline_mode<synchronous>, transform_indices = @transform_3, window_bounds = array<i64: 8, 32>}, {pipeline_mode = #tpu.pipeline_mode<synchronous>, transform_indices = @transform_4, window_bounds = array<i64: 1, 32>}, {transform_indices = @transform_5, window_bounds = array<i64: 2, 32, 256>}]} {
    %c0 = arith.constant 0 : index
    %c0_0 = arith.constant 0 : index
    %c0_1 = arith.constant 0 : index
    %0 = vector.load %arg1[%c0, %c0_0, %c0_1] : memref<2x32x256xf32, #tpu.memory_space<vmem>>, vector<2x32x256xf32>
    %cst = arith.constant dense<0.000000e+00> : vector<2x32xf32>
    %1 = vector.multi_reduction <add>, %0, %cst [2] : vector<2x32x256xf32> to vector<2x32xf32>
    %cst_2 = arith.constant 3.906250e-03 : f32
    %2 = vector.broadcast %cst_2 : f32 to vector<2x32xf32>
    %3 = arith.mulf %1, %2 : vector<2x32xf32>
    %c0_3 = arith.constant 0 : index
    %c0_4 = arith.constant 0 : index
    %4 = vector.load %arg2[%c0_3, %c0_4] : memref<32x8xf32, #tpu.memory_space<vmem>>, vector<32x8xf32>
    %cst_5 = arith.constant dense<0.000000e+00> : vector<2x8xf32>
    %5 = tpu.matmul %3, %4, %cst_5 {dimension_numbers = #tpu.dot_dimension_numbers<[1], [0], [0], [1], [0, 0, 1, 1], [], []>} : vector<2x32xf32>, vector<32x8xf32>, vector<2x8xf32> -> vector<2x8xf32>
    %c0_6 = arith.constant 0 : index
    %c0_7 = arith.constant 0 : index
    %6 = vector.load %arg3[%c0_6, %c0_7] : memref<1x8xf32, #tpu.memory_space<vmem>>, vector<1x8xf32>
    %7 = vector.broadcast %6 : vector<1x8xf32> to vector<2x8xf32>
    %8 = arith.addf %5, %7 : vector<2x8xf32>
    %cst_8 = arith.constant 0.000000e+00 : f32
    %cst_9 = arith.constant 6.000000e+00 : f32
    %9 = vector.broadcast %cst_8 : f32 to vector<2x8xf32>
    %10 = arith.maximumf %9, %8 : vector<2x8xf32>
    %11 = vector.broadcast %cst_9 : f32 to vector<2x8xf32>
    %12 = arith.minimumf %11, %10 : vector<2x8xf32>
    %c0_10 = arith.constant 0 : index
    %c0_11 = arith.constant 0 : index
    %13 = vector.load %arg4[%c0_10, %c0_11] : memref<8x32xf32, #tpu.memory_space<vmem>>, vector<8x32xf32>
    %cst_12 = arith.constant dense<0.000000e+00> : vector<2x32xf32>
    %14 = tpu.matmul %12, %13, %cst_12 {dimension_numbers = #tpu.dot_dimension_numbers<[1], [0], [0], [1], [0, 0, 1, 1], [], []>} : vector<2x8xf32>, vector<8x32xf32>, vector<2x32xf32> -> vector<2x32xf32>
    %c0_13 = arith.constant 0 : index
    %c0_14 = arith.constant 0 : index
    %15 = vector.load %arg5[%c0_13, %c0_14] : memref<1x32xf32, #tpu.memory_space<vmem>>, vector<1x32xf32>
    %16 = vector.broadcast %15 : vector<1x32xf32> to vector<2x32xf32>
    %17 = arith.addf %14, %16 : vector<2x32xf32>
    %cst_15 = arith.constant 0.000000e+00 : f32
    %cst_16 = arith.constant 6.000000e+00 : f32
    %18 = vector.broadcast %cst_15 : f32 to vector<2x32xf32>
    %19 = arith.maximumf %18, %17 : vector<2x32xf32>
    %20 = vector.broadcast %cst_16 : f32 to vector<2x32xf32>
    %21 = arith.minimumf %20, %19 : vector<2x32xf32>
    %22 = vector.shape_cast %21 : vector<2x32xf32> to vector<2x32x1xf32>
    %23 = vector.broadcast %22 : vector<2x32x1xf32> to vector<2x32x256xf32>
    %24 = arith.mulf %0, %23 : vector<2x32x256xf32>
    %c0_17 = arith.constant 0 : index
    %c0_18 = arith.constant 0 : index
    %c0_19 = arith.constant 0 : index
    %25 = vector.load %arg6[%c0_17, %c0_18, %c0_19] : memref<2x32x256xf32, #tpu.memory_space<vmem>>, vector<2x32x256xf32>
    tpu.vector_store %arg6[%c0_17, %c0_18, %c0_19], %24 {strides = array<i32>} : memref<2x32x256xf32, #tpu.memory_space<vmem>>, vector<2x32x256xf32>,
    return
  }
  func.func @transform_0(%arg0: i32) -> (i32, i32, i32) {
    %c0_i32 = arith.constant 0 : i32
    %c0_i32_0 = arith.constant 0 : i32
    %c0_i32_1 = arith.constant 0 : i32
    return %arg0, %c0_i32, %c0_i32_0 : i32, i32, i32
  }
  func.func @transform_1(%arg0: i32) -> (i32, i32) {
    %c0_i32 = arith.constant 0 : i32
    %c0_i32_0 = arith.constant 0 : i32
    %c0_i32_1 = arith.constant 0 : i32
    return %c0_i32, %c0_i32_0 : i32, i32
  }
  func.func @transform_2(%arg0: i32) -> (i32, i32) {
    %c0_i32 = arith.constant 0 : i32
    %c0_i32_0 = arith.constant 0 : i32
    %c0_i32_1 = arith.constant 0 : i32
    return %c0_i32, %c0_i32_0 : i32, i32
  }
  func.func @transform_3(%arg0: i32) -> (i32, i32) {
    %c0_i32 = arith.constant 0 : i32
    %c0_i32_0 = arith.constant 0 : i32
    %c0_i32_1 = arith.constant 0 : i32
    return %c0_i32, %c0_i32_0 : i32, i32
  }
  func.func @transform_4(%arg0: i32) -> (i32, i32) {
    %c0_i32 = arith.constant 0 : i32
    %c0_i32_0 = arith.constant 0 : i32
    %c0_i32_1 = arith.constant 0 : i32
    return %c0_i32, %c0_i32_0 : i32, i32
  }
  func.func @transform_5(%arg0: i32) -> (i32, i32, i32) {
    %c0_i32 = arith.constant 0 : i32
    %c0_i32_0 = arith.constant 0 : i32
    %c0_i32_1 = arith.constant 0 : i32
    return %arg0, %c0_i32, %c0_i32_0 : i32, i32, i32
  }
}

</mosaic_0001>

<bundles_post_ra>
// kernel: tpu_custom_call.1
= control target key start
LH: loop header
LB: loop body
LE: loop exit
PB: predicated region body
PF: predicated region fallthrough
CT: control target
= control target key end

     0   :  { %10 = vsyncpa [#allocation3], 0  ;;  %s606_s0 = inlined_call_operand.hbm [shape: f32[2,32,256], index: 0, kind: input, shape index: {}]   ;;  %s607_s1 = inlined_call_operand.vmem [shape: f32[32,8], index: 1, kind: input, shape index: {}]   ;;  %s608_s2 = inlined_call_operand.vmem [shape: f32[1,8], index: 2, kind: input, shape index: {}]   ;;  %s609_s3 = inlined_call_operand.vmem [shape: f32[8,32], index: 3, kind: input, shape index: {}]   ;;  %s610_s4 = inlined_call_operand.vmem [shape: f32[1,32], index: 4, kind: input, shape index: {}]   ;;  %s611_s5 = inlined_call_operand.hbm [shape: f32[2,32,256], index: 5, kind: output, shape index: {}]  }
   0x1   :  { %11 = vsyncpa [#allocation4], 0  ;;  %s473_s18 = smov [#allocation2]  }
   0x2   :  { %s17_s19 = sshll.u32 %s473_s18, 4  ;;  %s18_s19 = int_to_ptr.vmem [resolvable:$true] %s17_s19 }
   0x3   :  { %s437_s20 = scalar_lea.vmem %s18_s19, 2048  ;;  %p442_p1 = scmp.lt.s32.totalorder %s18_s19, %s18_s19 }
   0x4   :  { %p438_p0 = scmp.ne.s32.totalorder %s18_s19, %s437_s20  ;;  %p443_p2 = scmp.lt.s32.totalorder %s437_s20, %s437_s20 }
   0x6   :  { %p444_p3 = por %p443_p2, %p442_p1 }
   0x8   :  { %p445_p4 = pnand %p444_p3, %p438_p0 }
   0xa   :  { %448 = shalt.err (!%p445_p4)
}
   0xb   :  { %s474_s21 = smov 256   ;;  %s475_s22 = smov 16  }
   0xc   :  { %23 = dma.hbm_to_vmem [thread:$0]  %s606_s0, 2048, %s18_s19, [#allocation3], %s474_s21, %s474_s21, %s475_s22  }
   0xd   :  { %469 = dma.done.wait [#allocation3], 2048  }
   0xe   :  { %470 = vsyncadd [#allocation3], 4294965248  ;;  %v515_v0 = vld [vmem:[#allocation2 + $0x40] sm:$0xff]  ;;  %v517_v1 = vld [vmem:[#allocation2 + $0x48] sm:$0xff]  ;;  %v476_v24 = vmov 0.0   ;;  %vm477_vm0 = vmmov 0   ;;  %v102_v29 = vlaneseq }
   0xf   :  { %v519_v2 = vld [vmem:[#allocation2] sm:$0xff]  ;;  %v63_v3 = vadd.f32 %v517_v1, %v515_v0  ;;  %v523_v4 = vld [vmem:[#allocation2 + $0x8] sm:$0xff]  ;;  %v525_v5 = vld [vmem:[#allocation2 + $0x50] sm:$0xff]  ;;  %407 = vmatprep.subr.mxu0 %v476_v24  ;;  %418 = vmatprep.subr.mxu1 %v476_v24  ;;  %vm113_vm1 = vcmask 130112   ;;  %vm120_vm2 = vcmask 195712   ;;  %vm127_vm3 = vcmask 261312  }
  0x10   :  { %v527_v6 = vld [vmem:[#allocation2 + $0x58] sm:$0xff]  ;;  %v51_v7 = vadd.f32 %v523_v4, %v519_v2  ;;  %v531_v8 = vld [vmem:[#allocation2 + $0x10] sm:$0xff]  ;;  %v539_v12 = vld [vmem:[#allocation2 + $0x60] sm:$0xff]  ;;  %415 = vmatprep.mubr.msk.f32.mxu0 %vm477_vm0, %v476_v24  ;;  %420 = vmatprep.mubr.msk.f32.mxu1 %vm477_vm0, %v476_v24  ;;  %v103_v31 = vand.u32 127, %v102_v29  ;;  %v105_v36 = vshrl.u32 %v102_v29, 7  ;;  %vm148_vm4 = vcmask 1041409  }
  0x11   :  { %v533_v9 = vld [vmem:[#allocation2 + $0x18] sm:$0xff]  ;;  %64 = vadd.xlane.f32.xlu1 %v63_v3  ;;  %v66_v10 = vadd.f32 %v527_v6, %v525_v5  ;;  %v541_v13 = vld [vmem:[#allocation2 + $0x68] sm:$0xff]  ;;  %v543_v14 = vld [vmem:[#allocation2 + $0x20] sm:$0xff]  ;;  %vm150_vm5 = vcmask 261120   ;;  %vm233_vm6 = vcmask 64512  }
  0x12   :  { %52 = vadd.xlane.f32.xlu0 %v51_v7  ;;  %v54_v11 = vadd.f32 %v533_v9, %v531_v8  ;;  %v545_v15 = vld [vmem:[#allocation2 + $0x28] sm:$0xff]  ;;  %v69_v16 = vadd.f32 %v541_v13, %v539_v12  ;;  %v551_v18 = vld [vmem:[#allocation2 + $0x70] sm:$0xff]  ;;  %v553_v19 = vld [vmem:[#allocation2 + $0x78] sm:$0xff]  ;;  %v108_v33 = vadd.s32 4294967288, %v103_v31  ;;  %v115_v35 = vadd.s32 4294967280, %v103_v31 }
  0x13   :  { %v57_v17 = vadd.f32 %v545_v15, %v543_v14  ;;  %v555_v20 = vld [vmem:[#allocation2 + $0x30] sm:$0xff]  ;;  %v557_v21 = vld [vmem:[#allocation2 + $0x38] sm:$0xff]  ;;  %v72_v22 = vadd.f32 %v553_v19, %v551_v18  ;;  %v84_v27 = vld [vmem:[%s607_s1 + $0x8] sm:$0xff]  ;;  %v122_v40 = vadd.s32 4294967272, %v103_v31  ;;  %v106_v44 = vsub.s32 %v103_v31, %v105_v36 }
  0x14   :  { %v60_v23 = vadd.f32 %v557_v21, %v555_v20  ;;  %v86_v25 = vld [vmem:[%s607_s1 + $0x18] sm:$0xff]  ;;  %v85_v26 = vld [vmem:[%s607_s1 + $0x10] sm:$0xff]  ;;  %v83_v28 = vld [vmem:[%s607_s1] sm:$0xff]  ;;  %v111_v38 = vsub.s32 %v108_v33, %v105_v36  ;;  %v118_v42 = vsub.s32 %v115_v35, %v105_v36 }
  0x15   :  { %67 = vadd.xlane.f32.xlu1 %v66_v10  ;;  %408 = vmatpush3.msra.mxu0 %v86_v25  ;;  %v125_v51 = vsub.s32 %v122_v40, %v105_v36  ;;  %v398_v29 = vld [vmem:[%s610_s4] ss:$0 sm:$0xff] }
  0x16   :  { %55 = vadd.xlane.f32.xlu0 %v54_v11  ;;  %409 = vmatprep.subr.mxu0 %v476_v24 }
  0x17   :  { %410 = vmatpush3.msra.mxu0 %v85_v26 }
  0x18   :  { %411 = vmatprep.subr.mxu0 %v476_v24 }
  0x19   :  { %70 = vadd.xlane.f32.xlu1 %v69_v16  ;;  %412 = vmatpush3.msra.mxu0 %v84_v27 }
  0x1a   :  { %58 = vadd.xlane.f32.xlu0 %v57_v17  ;;  %413 = vmatprep.subr.mxu0 %v476_v24 }
  0x1b   :  { %414 = vmatpush3.msra.mxu0 %v83_v28 }
  0x1d   :  { %73 = vadd.xlane.f32.xlu1 %v72_v22  ;;  %v225_v22 = vld [vmem:[%s609_s3] sm:$0xff] }
  0x1e   :  { %61 = vadd.xlane.f32.xlu0 %v60_v23  ;;  %419 = vmatpush3.msra.mxu1 %v225_v22  ;;  %v396_v23 = vld [vmem:[%s608_s2] ss:$0 sm:$0xff]  ;;  %s478_s2 = smov [#allocation5]  }
  0x1f   :  { %s384_s3 = sshll.u32 %s478_s2, 4  ;;  %s385_s3 = int_to_ptr.vmem [resolvable:$true] %s384_s3 }
  0x20   :  { %s449_s4 = scalar_lea.vmem %s385_s3, 2048  ;;  %p454_p6 = scmp.lt.s32.totalorder %s385_s3, %s385_s3 }
  0x21   :  { %p450_p5 = scmp.ne.s32.totalorder %s385_s3, %s449_s4  ;;  %p455_p7 = scmp.lt.s32.totalorder %s449_s4, %s449_s4 }
  0x23   :  { %p456_p8 = por %p455_p7, %p454_p6 }
  0x25   :  { %p457_p9 = pnand %p456_p8, %p450_p5 }
  0x9a   :  { %v65_v30 = vpop.xlane.xlu1 %64 }
  0x9b   :  { %v53_v32 = vpop.xlane.xlu0 %52  ;;  %v79_v45 = vmul.f32 0.00390625, %v65_v30 }
  0x9c   :  { %v75_v48 = vmul.f32 0.00390625, %v53_v32 }
  0x9d   :  { %v132_v55 = vrot.slane %v79_v45, %v106_v44 }
  0x9e   :  { %v68_v34 = vpop.xlane.xlu1 %67  ;;  %v107_v59 = vrot.slane %v75_v48, %v106_v44 }
  0x9f   :  { %v56_v37 = vpop.xlane.xlu0 %55  ;;  %v80_v39 = vmul.f32 0.00390625, %v68_v34  ;;  %v311_v34 = vsub.s32 0, %v105_v36 }
  0xa0   :  { %v76_v41 = vmul.f32 0.00390625, %v56_v37 }
  0xa1   :  { %v136_v50 = vrot.slane %v80_v39, %v111_v38 }
  0xa2   :  { %v71_v43 = vpop.xlane.xlu1 %70  ;;  %v112_v52 = vrot.slane %v76_v41, %v111_v38  ;;  %v330_v38 = vsub.s32 1, %v105_v36 }
  0xa3   :  { %v81_v46 = vmul.f32 0.00390625, %v71_v43  ;;  %v59_v47 = vpop.xlane.xlu0 %58  ;;  %v137_v61 = vsel %vm113_vm1, %v136_v50, %v132_v55 }
  0xa4   :  { %v77_v49 = vmul.f32 0.00390625, %v59_v47  ;;  %v114_v63 = vsel %vm113_vm1, %v112_v52, %v107_v59 }
  0xa5   :  { %v141_v53 = vrot.slane %v81_v46, %v118_v42 }
  0xa6   :  { %v74_v54 = vpop.xlane.xlu1 %73  ;;  %v119_v56 = vrot.slane %v77_v49, %v118_v42 }
  0xa7   :  { %v82_v57 = vmul.f32 0.00390625, %v74_v54  ;;  %v62_v58 = vpop.xlane.xlu0 %61  ;;  %v142_v3 = vsel %vm120_vm2, %v141_v53, %v137_v61 }
  0xa8   :  { %v78_v60 = vmul.f32 0.00390625, %v62_v58  ;;  %v121_v10 = vsel %vm120_vm2, %v119_v56, %v114_v63 }
  0xa9   :  { %v146_v62 = vrot.slane %v82_v57, %v125_v51 }
  0xaa   :  { %v126_v7 = vrot.slane %v78_v60, %v125_v51 }
  0xab   :  { %v147_v11 = vsel %vm127_vm3, %v146_v62, %v142_v3 }
  0xac   :  { %v128_v16 = vsel %vm127_vm3, %v126_v7, %v121_v10 }
  0xad   :  { %v149_v17 = vsel %vm148_vm4, %v147_v11, %v128_v16 }
  0xae   :  { %416 = vmatmul.mubr.msk.f32.vlgmr.msra.gmra.mxu0 %vm150_vm5, %v149_v17 }
 0x16e   :  { %v219_v24 = vpop.f32.mrf.mxu0 }
 0x16f   :  { %v220_v25 = vadd.f32 %v396_v23, %v219_v24 }
 0x170   :  { %v417_v26 = vpop.f32.mrf.mxu0 }
 0x171   :  { %v223_v27 = vmax.f32 %v220_v25, 0.0 }
 0x173   :  { %v224_v28 = vmin.f32 %v223_v27, 6.0 }
 0x175   :  { %421 = vmatmul.mubr.msk.f32.vlgmr.msra.gmra.mxu1 %vm233_vm6, %v224_v28 }
 0x235   :  { %v303_v30 = vpop.f32.mrf.mxu1 }
 0x236   :  { %v304_v31 = vadd.f32 %v398_v29, %v303_v30 }
 0x237   :  { %v422_v32 = vpop.f32.mrf.mxu1 }
 0x238   :  { %v307_v33 = vmax.f32 %v304_v31, 0.0 }
 0x23a   :  { %v308_v35 = vmin.f32 %v307_v33, 6.0 }
 0x23c   :  { %v312_v37 = vrot.slane %v308_v35, %v311_v34  ;;  %v331_v39 = vrot.slane %v308_v35, %v330_v38 }
 0x23e   :  { %318 = vbcast.lane.b32.xlu1 %v312_v37, 264  ;;  %314 = vbcast.lane.b32.xlu0 %v312_v37, 256 }
 0x242   :  { %322 = vbcast.lane.b32.xlu1 %v312_v37, 272  ;;  %333 = vbcast.lane.b32.xlu0 %v331_v39, 256 }
 0x246   :  { %326 = vbcast.lane.b32.xlu1 %v312_v37, 280  ;;  %341 = vbcast.lane.b32.xlu0 %v331_v39, 272 }
 0x24a   :  { %337 = vbcast.lane.b32.xlu1 %v331_v39, 264 }
 0x24e   :  { %345 = vbcast.lane.b32.xlu1 %v331_v39, 280 }
 0x2b0   :  { %v319_v40 = vpop.permute.xlu1 %318  ;;  %v315_v41 = vpop.permute.xlu0 %314 }
 0x2b1   :  { %v349_v42 = vmul.f32 %v319_v40, %v531_v8  ;;  %v350_v43 = vmul.f32 %v319_v40, %v533_v9  ;;  %v347_v44 = vmul.f32 %v315_v41, %v519_v2  ;;  %v348_v45 = vmul.f32 %v315_v41, %v523_v4 }
 0x2b3   :  { %365 = vst [vmem:[#allocation5 + $0x10] sm:$0xff] %v349_v42  ;;  %366 = vst [vmem:[#allocation5 + $0x18] sm:$0xff] %v350_v43 }
 0x2b4   :  { %363 = vst [vmem:[#allocation5] sm:$0xff] %v347_v44  ;;  %364 = vst [vmem:[#allocation5 + $0x8] sm:$0xff] %v348_v45  ;;  %v323_v36 = vpop.permute.xlu1 %322  ;;  %v334_v46 = vpop.permute.xlu0 %333 }
 0x2b5   :  { %v351_v47 = vmul.f32 %v323_v36, %v543_v14  ;;  %v352_v48 = vmul.f32 %v323_v36, %v545_v15  ;;  %v355_v49 = vmul.f32 %v334_v46, %v515_v0  ;;  %v356_v8 = vmul.f32 %v334_v46, %v517_v1 }
 0x2b7   :  { %367 = vst [vmem:[#allocation5 + $0x20] sm:$0xff] %v351_v47  ;;  %368 = vst [vmem:[#allocation5 + $0x28] sm:$0xff] %v352_v48 }
 0x2b8   :  { %371 = vst [vmem:[#allocation5 + $0x40] sm:$0xff] %v355_v49  ;;  %372 = vst [vmem:[#allocation5 + $0x48] sm:$0xff] %v356_v8  ;;  %v327_v2 = vpop.permute.xlu1 %326  ;;  %v342_v4 = vpop.permute.xlu0 %341 }
 0x2b9   :  { %v353_v9 = vmul.f32 %v327_v2, %v555_v20  ;;  %v354_v50 = vmul.f32 %v327_v2, %v557_v21  ;;  %v359_v51 = vmul.f32 %v342_v4, %v539_v12  ;;  %v360_v14 = vmul.f32 %v342_v4, %v541_v13 }
 0x2bb   :  { %369 = vst [vmem:[#allocation5 + $0x30] sm:$0xff] %v353_v9  ;;  %370 = vst [vmem:[#allocation5 + $0x38] sm:$0xff] %v354_v50 }
 0x2bc   :  { %375 = vst [vmem:[#allocation5 + $0x60] sm:$0xff] %v359_v51  ;;  %376 = vst [vmem:[#allocation5 + $0x68] sm:$0xff] %v360_v14  ;;  %v338_v0 = vpop.permute.xlu1 %337 }
 0x2bd   :  { %v357_v1 = vmul.f32 %v338_v0, %v525_v5  ;;  %v358_v15 = vmul.f32 %v338_v0, %v527_v6 }
 0x2bf   :  { %373 = vst [vmem:[#allocation5 + $0x50] sm:$0xff] %v357_v1  ;;  %374 = vst [vmem:[#allocation5 + $0x58] sm:$0xff] %v358_v15 }
 0x2c0   :  { %v346_v20 = vpop.permute.xlu1 %345 }
 0x2c1   :  { %v361_v21 = vmul.f32 %v346_v20, %v551_v18  ;;  %v362_v12 = vmul.f32 %v346_v20, %v553_v19 }
 0x2c3   :  { %377 = vst [vmem:[#allocation5 + $0x70] sm:$0xff] %v361_v21  ;;  %378 = vst [vmem:[#allocation5 + $0x78] sm:$0xff] %v362_v12 }
 0x2c4   :  { %460 = shalt.err (!%p457_p9)
}
 0x2c5   :  { %390 = dma.vmem_to_hbm [thread:$0]  %s385_s3, 2048, %s611_s5, [#allocation4], %s474_s21, %s474_s21, %s475_s22  }
 0x2c6   :  { %471 = dma.done.wait [#allocation4], 2048  }
 0x2c7   :  { %472 = vsyncadd [#allocation4], 4294965248 }
 0x2c8   :  { %394 = vsyncpa [#allocation3], 1 }
 0x2c9   :  { %395 = vsyncpa [#allocation4], 1 }

</bundles_post_ra>
